<compile_context>
chip_gen: v5e
topology: v5e:2x2
jax: 0.10.0
libtpu: 0.0.40
codegen_flags: <defaults>
</compile_context>

<pallas_src>
import jax
import jax.numpy as jnp
from jax import lax
from jax.experimental import pallas as pl
from jax.experimental.pallas import tpu as pltpu


def _round_up(n, m):
    return ((n + m - 1) // m) * m


def mlp_kernel(x_ref, w1_ref, b1_ref, w2t_ref, b2_ref, o_ref):
    # x_ref:   [TB, K]   activation tile for this batch block (K = 5, full-dim)
    # w1_ref:  [K, H]    hidden weights (H padded to 128), resident in VMEM
    # b1_ref:  [1, H]    hidden bias
    # w2t_ref: [N, H]    output weights pre-transposed (N = 4 padded to 8), resident
    # b2_ref:  [N, 1]    output bias (broadcast across lanes)
    # o_ref:   [N, TB]   transposed, lane-dense output tile (batch on lanes)
    x = x_ref[...]
    h = jnp.dot(x, w1_ref[...], preferred_element_type=jnp.float32) + b1_ref[...]
    h = jnp.tanh(h)                                             # [TB, H]
    # y^T = W2^T @ h^T : contract over H (last dim of both operands).
    y_t = lax.dot_general(
        w2t_ref[...], h,
        dimension_numbers=(((1,), (1,)), ((), ())),
        preferred_element_type=jnp.float32)                     # [N, TB]
    o_ref[...] = (y_t + b2_ref[...]).astype(o_ref.dtype)


def pad_params(w1, b1, w2, b2):
    """Pad / re-lay-out parameters once (outside the hot path).

    Inputs are in [in, out] layout (i.e. transposed vs. torch's nn.Linear.weight):
      w1: [d_in, d_hidden], b1: [d_hidden], w2: [d_hidden, d_out], b2: [d_out]

    Returns tensors laid out for the batch-on-lanes kernel:
      w1_p  [d_in, H]   H = round_up(d_hidden, 128), zero padded
      b1_p  [1, H]
      w2t_p [N, H]      N = round_up(d_out, 8); W2 transposed so the kernel
                        emits y^T directly
      b2_p  [N, 1]

    Zero padding is exact: padded hidden columns have zero weights in both
    layers and padded output rows are all-zero and sliced off.
    """
    d_in, d_hidden = w1.shape
    d_out = w2.shape[1]
    H = _round_up(d_hidden, 128)
    N = _round_up(d_out, 8)
    w1_p = jnp.zeros((d_in, H), w1.dtype).at[:, :d_hidden].set(w1)
    b1_p = jnp.zeros((1, H), b1.dtype).at[:, :d_hidden].set(b1.reshape(1, -1))
    w2t_p = jnp.zeros((N, H), w2.dtype).at[:d_out, :d_hidden].set(w2.T)
    b2_p = jnp.zeros((N, 1), b2.dtype).at[:d_out, 0].set(b2)
    return (w1_p, b1_p, w2t_p, b2_p), (d_in, d_hidden, d_out)


def _choose_tb(batch, block_rows):
    """Batch tile: multiple of 128 (lane-dense output), large, bounded padding,
    and >= 2 grid steps when the batch allows (both TensorCores on v7x)."""
    b_ceil = _round_up(batch, 128)
    tb = min(_round_up(block_rows, 128), b_ceil)
    if b_ceil >= 256 and b_ceil <= tb:
        tb = _round_up(b_ceil // 2, 128)
    return tb


def network_forward(x, padded_params, dims, *, block_rows=2048):
    """Forward pass matching the PyTorch module: x [B, d_in] f32 -> [B, d_out]."""
    w1_p, b1_p, w2t_p, b2_p = padded_params
    d_in, _, d_out = dims
    B = x.shape[0]
    assert x.shape[1] == d_in

    K = w1_p.shape[0]          # = d_in (5), no K padding needed
    H = w1_p.shape[1]          # 128
    N = w2t_p.shape[0]         # 8

    TB = _choose_tb(B, block_rows)
    B_pad = _round_up(B, TB)   # waste bounded by TB
    grid = (B_pad // TB,)

    out_t = pl.pallas_call(
        mlp_kernel,
        out_shape=jax.ShapeDtypeStruct((N, B_pad), x.dtype),
        grid_spec=pltpu.PrefetchScalarGridSpec(
            num_scalar_prefetch=0,
            grid=grid,
            in_specs=[
                pl.BlockSpec((TB, K), lambda i: (i, 0)),   # activations, tiled over batch
                pl.BlockSpec((K, H), lambda i: (0, 0)),    # weights resident in VMEM
                pl.BlockSpec((1, H), lambda i: (0, 0)),
                pl.BlockSpec((N, H), lambda i: (0, 0)),
                pl.BlockSpec((N, 1), lambda i: (0, 0)),
            ],
            out_specs=pl.BlockSpec((N, TB), lambda i: (0, i)),  # transposed, lane-dense
        ),
        compiler_params=pltpu.CompilerParams(
            dimension_semantics=("parallel",),  # shards batch grid across TCs on v7x
        ),
    )(x, w1_p, b1_p, w2t_p, b2_p)

    # Restore the module's logical layout [B, d_out]; this touches only the
    # compact [N, B_pad] slab (tiny compared to the old [B_pad, 128] slice).
    return out_t[:d_out, :B].T


def init_params(key, d_in, d_hidden, d_out):
    """Deterministic init mimicking nn.Linear's uniform(-1/sqrt(fan_in), 1/sqrt(fan_in))."""
    k1, k2, k3, k4 = jax.random.split(key, 4)
    lim1 = 1.0 / jnp.sqrt(jnp.float32(d_in))
    lim2 = 1.0 / jnp.sqrt(jnp.float32(d_hidden))
    # Stored pre-transposed: [in, out]
    w1 = jax.random.uniform(k1, (d_in, d_hidden), jnp.float32, -lim1, lim1)
    b1 = jax.random.uniform(k2, (d_hidden,), jnp.float32, -lim1, lim1)
    w2 = jax.random.uniform(k3, (d_hidden, d_out), jnp.float32, -lim2, lim2)
    b2 = jax.random.uniform(k4, (d_out,), jnp.float32, -lim2, lim2)
    return w1, b1, w2, b2


if __name__ == "__main__":
    n_state, n_control = 4, 1
    d_in = n_state + n_control          # 5
    d_hidden = 10 * d_in                # 50
    d_out = n_state                     # 4

    key = jax.random.PRNGKey(0)
    kx1, kx2, kp = jax.random.split(key, 3)

    w1, b1, w2, b2 = init_params(kp, d_in, d_hidden, d_out)
    padded, dims = pad_params(w1, b1, w2, b2)

    def ref(x):
        return jnp.tanh(x @ w1 + b1[None, :]) @ w2 + b2[None, :]

    # Case 1: larger batch -> two 512-row grid steps (exercises batch tiling /
    # both TensorCores on v7x).
    batch_large = 1024
    x_large = jax.random.normal(kx1, (batch_large, d_in), jnp.float32)
    y_large = network_forward(x_large, padded, dims)
    jax.block_until_ready(y_large)
    assert y_large.shape == (batch_large, d_out)
    assert jnp.allclose(y_large, ref(x_large), atol=1e-5, rtol=1e-5)

    # Case 2: small, non-aligned batch -> ragged block (OOB input lanes are
    # computed on garbage and sliced away).
    batch_small = 7
    x_small = jax.random.normal(kx2, (batch_small, d_in), jnp.float32)
    y_small = network_forward(x_small, padded, dims)
    jax.block_until_ready(y_small)
    assert y_small.shape == (batch_small, d_out)
    assert jnp.allclose(y_small, ref(x_small), atol=1e-5, rtol=1e-5)

    print("KERNEL_OK")
</pallas_src>

<mosaic_0001>
module attributes {stable_mosaic.version = 11 : i64} {
  func.func @mlp_kernel(%arg0: i32, %arg1: memref<512x5xf32, #tpu.memory_space<vmem>>, %arg2: memref<5x128xf32, #tpu.memory_space<vmem>>, %arg3: memref<1x128xf32, #tpu.memory_space<vmem>>, %arg4: memref<8x128xf32, #tpu.memory_space<vmem>>, %arg5: memref<8x1xf32, #tpu.memory_space<vmem>>, %arg6: memref<8x512xf32, #tpu.memory_space<vmem>>) attributes {dimension_semantics = [#tpu.dimension_semantics<parallel>], iteration_bounds = array<i64: 2>, scalar_prefetch = 0 : i64, scratch_operands = 0 : i64, tpu.core_type = #tpu.core_type<tc>, window_params = [{transform_indices = @transform_0, window_bounds = array<i64: 512, 5>}, {pipeline_mode = #tpu.pipeline_mode<synchronous>, transform_indices = @transform_1, window_bounds = array<i64: 5, 128>}, {pipeline_mode = #tpu.pipeline_mode<synchronous>, transform_indices = @transform_2, window_bounds = array<i64: 1, 128>}, {pipeline_mode = #tpu.pipeline_mode<synchronous>, transform_indices = @transform_3, window_bounds = array<i64: 8, 128>}, {pipeline_mode = #tpu.pipeline_mode<synchronous>, transform_indices = @transform_4, window_bounds = array<i64: 8, 1>}, {transform_indices = @transform_5, window_bounds = array<i64: 8, 512>}]} {
    %c0 = arith.constant 0 : index
    %c0_0 = arith.constant 0 : index
    %0 = vector.load %arg1[%c0, %c0_0] : memref<512x5xf32, #tpu.memory_space<vmem>>, vector<512x5xf32>
    %c0_1 = arith.constant 0 : index
    %c0_2 = arith.constant 0 : index
    %1 = vector.load %arg2[%c0_1, %c0_2] : memref<5x128xf32, #tpu.memory_space<vmem>>, vector<5x128xf32>
    %cst = arith.constant dense<0.000000e+00> : vector<512x128xf32>
    %2 = tpu.matmul %0, %1, %cst {dimension_numbers = #tpu.dot_dimension_numbers<[1], [0], [0], [1], [0, 0, 1, 1], [], []>} : vector<512x5xf32>, vector<5x128xf32>, vector<512x128xf32> -> vector<512x128xf32>
    %c0_3 = arith.constant 0 : index
    %c0_4 = arith.constant 0 : index
    %3 = vector.load %arg3[%c0_3, %c0_4] : memref<1x128xf32, #tpu.memory_space<vmem>>, vector<1x128xf32>
    %4 = vector.broadcast %3 : vector<1x128xf32> to vector<512x128xf32>
    %5 = arith.addf %2, %4 : vector<512x128xf32>
    %6 = math.tanh %5 : vector<512x128xf32>
    %c0_5 = arith.constant 0 : index
    %c0_6 = arith.constant 0 : index
    %7 = vector.load %arg4[%c0_5, %c0_6] : memref<8x128xf32, #tpu.memory_space<vmem>>, vector<8x128xf32>
    %cst_7 = arith.constant dense<0.000000e+00> : vector<8x512xf32>
    %8 = tpu.matmul %7, %6, %cst_7 {dimension_numbers = #tpu.dot_dimension_numbers<[1], [1], [0], [0], [0, 0, 1, 0], [], []>} : vector<8x128xf32>, vector<512x128xf32>, vector<8x512xf32> -> vector<8x512xf32>
    %c0_8 = arith.constant 0 : index
    %c0_9 = arith.constant 0 : index
    %9 = vector.load %arg5[%c0_8, %c0_9] : memref<8x1xf32, #tpu.memory_space<vmem>>, vector<8x1xf32>
    %10 = vector.broadcast %9 : vector<8x1xf32> to vector<8x512xf32>
    %11 = arith.addf %8, %10 : vector<8x512xf32>
    %c0_10 = arith.constant 0 : index
    %c0_11 = arith.constant 0 : index
    %12 = vector.load %arg6[%c0_10, %c0_11] : memref<8x512xf32, #tpu.memory_space<vmem>>, vector<8x512xf32>
    tpu.vector_store %arg6[%c0_10, %c0_11], %11 {strides = array<i32>} : memref<8x512xf32, #tpu.memory_space<vmem>>, vector<8x512xf32>,
    return
  }
  func.func @transform_0(%arg0: i32) -> (i32, i32) {
    %c0_i32 = arith.constant 0 : i32
    %c0_i32_0 = arith.constant 0 : i32
    return %arg0, %c0_i32 : i32, i32
  }
  func.func @transform_1(%arg0: i32) -> (i32, i32) {
    %c0_i32 = arith.constant 0 : i32
    %c0_i32_0 = arith.constant 0 : i32
    %c0_i32_1 = arith.constant 0 : i32
    return %c0_i32, %c0_i32_0 : i32, i32
  }
  func.func @transform_2(%arg0: i32) -> (i32, i32) {
    %c0_i32 = arith.constant 0 : i32
    %c0_i32_0 = arith.constant 0 : i32
    %c0_i32_1 = arith.constant 0 : i32
    return %c0_i32, %c0_i32_0 : i32, i32
  }
  func.func @transform_3(%arg0: i32) -> (i32, i32) {
    %c0_i32 = arith.constant 0 : i32
    %c0_i32_0 = arith.constant 0 : i32
    %c0_i32_1 = arith.constant 0 : i32
    return %c0_i32, %c0_i32_0 : i32, i32
  }
  func.func @transform_4(%arg0: i32) -> (i32, i32) {
    %c0_i32 = arith.constant 0 : i32
    %c0_i32_0 = arith.constant 0 : i32
    %c0_i32_1 = arith.constant 0 : i32
    return %c0_i32, %c0_i32_0 : i32, i32
  }
  func.func @transform_5(%arg0: i32) -> (i32, i32) {
    %c0_i32 = arith.constant 0 : i32
    %c0_i32_0 = arith.constant 0 : i32
    return %c0_i32, %arg0 : i32, i32
  }
}

</mosaic_0001>

<bundles_post_ra>
// kernel: tpu_custom_call.1
= control target key start
LH: loop header
LB: loop body
LE: loop exit
PB: predicated region body
PF: predicated region fallthrough
CT: control target
= control target key end

     0   :  { %10 = vsyncpa [#allocation3], 0  ;;  %s1689_s0 = inlined_call_operand.vmem [shape: f32[1024,5], index: 0, kind: input, shape index: {}]   ;;  %s1690_s1 = inlined_call_operand.vmem [shape: f32[5,128], index: 1, kind: input, shape index: {}]   ;;  %s1691_s2 = inlined_call_operand.vmem [shape: f32[1,128], index: 2, kind: input, shape index: {}]   ;;  %s1692_s3 = inlined_call_operand.vmem [shape: f32[8,128], index: 3, kind: input, shape index: {}]   ;;  %s1693_s4 = inlined_call_operand.vmem [shape: f32[8,1], index: 4, kind: input, shape index: {}]   ;;  %s1694_s5 = inlined_call_operand.hbm [shape: f32[8,1024], index: 5, kind: output, shape index: {}]  }
   0x1   :  { %12 = vsyncpa [#allocation3 + $0x1], 0  ;;  %s1277_s18 = smov 0   ;;  %s1279_s19 = smov 0  }
   0x2   :  { %s1281_s20 = smov 0   ;;  %s1283_s21 = smov 0  }
   0x3 LB: > { %s1298_s22 = sadd.s32 4294967295, %s1244_s21   ;;  %s932_s23 = sadd.s32 4294967294, %s1244_s21   ;;  %s1244_s21 = sphi %s1283_s21, %s1700_s21   ;;  %s1240_s20 = sphi %s1281_s20, %s1699_s20   ;;  %s1236_s19 = sphi %s1279_s19, %s1698_s19   ;;  %s1232_s18 = sphi %s1277_s18, %s1697_s18  }
   0x4   : > { %s1302_s24 = sadd.s32 1, %s1244_s21   ;;  %s135_s25 = sadd.s32 1, %s1240_s20 }
   0x5   : > { %s132_s26 = ssub.s32 %s1244_s21, %s1302_s24  ;;  %p145_p0 = scmp.ne.s32.totalorder %s1240_s20, %s1236_s19 }
   0x6   : > { %p133_p1 = scmp.eq.s32.totalorder %s132_s26, 0  ;;  %p146_p2 = scmp.eq.s32.totalorder %s1298_s22, 1 }
   0x7   : > { %p151_p3 = scmp.ne.s32.totalorder %s1236_s19, %s1232_s18  ;;  %p152_p4 = scmp.eq.s32.totalorder %s932_s23, 1 }
   0x8   : > { %s1313_s27 = scalar_select %p133_p1, %s1240_s20, %s135_s25  }
   0x9   : > { %p1315_p5 = por %p146_p2, %p145_p0  ;;  %p1319_p6 = por %p152_p4, %p151_p3 }
   0xa   : > { %p935_p7 = scmp.ge.s32.totalorder %s1244_s21, 1  ;;  %p191_p8 = scmp.lt.s32.totalorder %s1244_s21, 3 }
   0xc   : > { %p192_p9 = pnand %p935_p7, %p191_p8 }
   0xd   : > { %s937_s7 = sshll.u32 (!%p192_p9), %s1298_s22, 6  ;;  %s216_s23 = sand.u32 (!%p192_p9), 1, %s1236_s19  }
   0xe   : > { %195 = sbr.rel (%p192_p9) target bundleno = 536 (0x218), region = 40  ;;  %p220_p10 = scmp.lt.s32.totalorder (!%p192_p9), %s937_s7, 127 }
   0xf   : > { %s936_s25 = sshll.u32 (!%p192_p9), %s216_s23, 5  ;;  %s1009_s30 = sshll.u32 (!%p192_p9), %s1298_s22, 5 }
  0x10   : > { %s218_s26 = scalar_lea.vmem (!%p192_p9), [#allocation2], %s936_s25  ;;  %s1202_s15 = scalar_lea.hbm (!%p192_p9), %s1694_s5, 64 }
  0x11   : > { %s870_s9 = sshll.u32 (!%p192_p9), %s218_s26, 4  ;;  %s871_s9 = int_to_ptr.vmem [resolvable:$true] %s870_s9 }
  0x13   : > { %v290_v0 = vld [vmem:[%s1690_s1] sm:$0x1f]  ;;  %vm488_vm0 = vcmask 1044480   ;;  %s1702_s7 = smov (!%p220_p10, %s937_s7), 127  ;;  %vm295_vm1 = vcmask 39936  }
  0x14   : > { %939 = vmatpush.msk.msra.mxu0 %vm488_vm0, %v290_v0  ;;  %1010 = vmatpush.msk.msra.mxu2 %vm488_vm0, %v290_v0  ;;  %s938_s8 = sshll.u32 %s1702_s7, 3 }
  0x15   : > { %1011 = vmatpush.msk.msra.mxu3 %vm488_vm0, %v290_v0  ;;  %s1332_s11 = scalar_lea.vmem %s1689_s0, %s938_s8  ;;  %s868_s8 = scalar_lea.hbm %s1694_s5, %s1009_s30 }
  0x16   : > { %v226_v1 = vld [vmem:[%s1332_s11] sm:$0xff]  ;;  %v249_v2 = vld [vmem:[%s1332_s11 + $0xb8] sm:$0xff]  ;;  %v227_v4 = vld [vmem:[%s1332_s11 + $0x8] sm:$0xff]  ;;  %s872_s10 = sshll.u32 %s868_s8, 4  ;;  %s873_s10 = int_to_ptr.hbm [resolvable:$true] %s872_s10 }
  0x17   : > { %v269_v3 = vld [vmem:[%s1332_s11 + $0x158] sm:$0xff]  ;;  %940 = vmatmul.msk.f32.vlgmr.msra.gmra.mxu0 %vm295_vm1, %v226_v1  ;;  %963 = vmatmul.msk.f32.vlgmr.msra.gmra.mxu2 %vm295_vm1, %v249_v2  ;;  %v250_v5 = vld [vmem:[%s1332_s11 + $0xc0] sm:$0xff]  ;;  %v228_v7 = vld [vmem:[%s1332_s11 + $0x10] sm:$0xff]  ;;  %s1196_s12 = sshra.s32 %s873_s10, 4  ;;  %s1197_s12 = int_to_ptr.hbm [resolvable:$true] %s1196_s12 }
  0x18   : > { %983 = vmatmul.msk.f32.vlgmr.msra.gmra.mxu3 %vm295_vm1, %v269_v3  ;;  %v270_v6 = vld [vmem:[%s1332_s11 + $0x160] sm:$0xff]  ;;  %v251_v8 = vld [vmem:[%s1332_s11 + $0xc8] sm:$0xff]  ;;  %v229_v10 = vld [vmem:[%s1332_s11 + $0x18] sm:$0xff]  ;;  %s1198_s13 = scalar_lea.hbm %s1197_s12, 32  ;;  %p1203_p0 = scmp.lt.s32.totalorder %s1197_s12, %s1694_s5 }
  0x19   : > { %v271_v9 = vld [vmem:[%s1332_s11 + $0x168] sm:$0xff]  ;;  %v252_v11 = vld [vmem:[%s1332_s11 + $0xd0] sm:$0xff]  ;;  %v230_v13 = vld [vmem:[%s1332_s11 + $0x20] sm:$0xff]  ;;  %p1199_p11 = scmp.ne.s32.totalorder %s1197_s12, %s1198_s13  ;;  %p1204_p1 = scmp.lt.s32.totalorder %s1202_s15, %s1198_s13 }
  0x1a   : > { %v272_v12 = vld [vmem:[%s1332_s11 + $0x170] sm:$0xff]  ;;  %v253_v14 = vld [vmem:[%s1332_s11 + $0xd8] sm:$0xff]  ;;  %v231_v16 = vld [vmem:[%s1332_s11 + $0x28] sm:$0xff] }
  0x1b   : > { %v273_v15 = vld [vmem:[%s1332_s11 + $0x178] sm:$0xff]  ;;  %v254_v17 = vld [vmem:[%s1332_s11 + $0xe0] sm:$0xff]  ;;  %v232_v19 = vld [vmem:[%s1332_s11 + $0x30] sm:$0xff]  ;;  %p1200_p12 = pnand %p1199_p11, %p1315_p5  ;;  %p1205_p2 = por %p1204_p1, %p1203_p0 }
  0x1c   : > { %v274_v18 = vld [vmem:[%s1332_s11 + $0x180] sm:$0xff]  ;;  %v255_v20 = vld [vmem:[%s1332_s11 + $0xe8] sm:$0xff]  ;;  %v233_v22 = vld [vmem:[%s1332_s11 + $0x38] sm:$0xff] }
  0x1d   : > { %v275_v21 = vld [vmem:[%s1332_s11 + $0x188] sm:$0xff]  ;;  %v256_v23 = vld [vmem:[%s1332_s11 + $0xf0] sm:$0xff]  ;;  %v234_v25 = vld [vmem:[%s1332_s11 + $0x40] sm:$0xff]  ;;  %p1201_p13 = pneg %p1200_p12 }
  0x1e   : > { %v276_v24 = vld [vmem:[%s1332_s11 + $0x190] sm:$0xff]  ;;  %v257_v26 = vld [vmem:[%s1332_s11 + $0xf8] sm:$0xff]  ;;  %v235_v28 = vld [vmem:[%s1332_s11 + $0x48] sm:$0xff] }
  0x1f   : > { %941 = vmatmul.msk.f32.gmra.mxu0 %vm295_vm1, %v227_v4  ;;  %964 = vmatmul.msk.f32.gmra.mxu2 %vm295_vm1, %v250_v5  ;;  %v277_v27 = vld [vmem:[%s1332_s11 + $0x198] sm:$0xff]  ;;  %v258_v29 = vld [vmem:[%s1332_s11 + $0x100] sm:$0xff]  ;;  %v236_v31 = vld [vmem:[%s1332_s11 + $0x50] sm:$0xff]  ;;  %p1206_p3 = pnand %p1205_p2, %p1201_p13 }
  0x20   : > { %984 = vmatmul.msk.f32.gmra.mxu3 %vm295_vm1, %v270_v6  ;;  %v278_v30 = vld [vmem:[%s1332_s11 + $0x1a0] sm:$0xff]  ;;  %v259_v32 = vld [vmem:[%s1332_s11 + $0x108] sm:$0xff]  ;;  %v237_v34 = vld [vmem:[%s1332_s11 + $0x58] sm:$0xff] }
  0x21   : > { %v279_v33 = vld [vmem:[%s1332_s11 + $0x1a8] sm:$0xff]  ;;  %v260_v35 = vld [vmem:[%s1332_s11 + $0x110] sm:$0xff]  ;;  %v238_v37 = vld [vmem:[%s1332_s11 + $0x60] sm:$0xff] }
  0x22   : > { %v280_v36 = vld [vmem:[%s1332_s11 + $0x1b0] sm:$0xff]  ;;  %v261_v38 = vld [vmem:[%s1332_s11 + $0x118] sm:$0xff]  ;;  %v239_v40 = vld [vmem:[%s1332_s11 + $0x68] sm:$0xff] }
  0x23   : > { %v281_v39 = vld [vmem:[%s1332_s11 + $0x1b8] sm:$0xff]  ;;  %v262_v41 = vld [vmem:[%s1332_s11 + $0x120] sm:$0xff]  ;;  %v240_v43 = vld [vmem:[%s1332_s11 + $0x70] sm:$0xff] }
  0x24   : > { %v282_v42 = vld [vmem:[%s1332_s11 + $0x1c0] sm:$0xff]  ;;  %v263_v44 = vld [vmem:[%s1332_s11 + $0x128] sm:$0xff]  ;;  %v241_v46 = vld [vmem:[%s1332_s11 + $0x78] sm:$0xff] }
  0x25   : > { %v283_v45 = vld [vmem:[%s1332_s11 + $0x1c8] sm:$0xff]  ;;  %v264_v47 = vld [vmem:[%s1332_s11 + $0x130] sm:$0xff]  ;;  %v242_v50 = vld [vmem:[%s1332_s11 + $0x80] sm:$0xff] }
  0x26   : > { %v284_v48 = vld [vmem:[%s1332_s11 + $0x1d0] sm:$0xff]  ;;  %v265_v51 = vld [vmem:[%s1332_s11 + $0x138] sm:$0xff]  ;;  %v243_v56 = vld [vmem:[%s1332_s11 + $0x88] sm:$0xff] }
  0x27   : > { %942 = vmatmul.msk.f32.gmra.mxu0 %vm295_vm1, %v228_v7  ;;  %965 = vmatmul.msk.f32.gmra.mxu2 %vm295_vm1, %v251_v8  ;;  %v285_v52 = vld [vmem:[%s1332_s11 + $0x1d8] sm:$0xff]  ;;  %v266_v57 = vld [vmem:[%s1332_s11 + $0x140] sm:$0xff]  ;;  %v244_v62 = vld [vmem:[%s1332_s11 + $0x90] sm:$0xff] }
  0x28   : > { %985 = vmatmul.msk.f32.gmra.mxu3 %vm295_vm1, %v271_v9  ;;  %v286_v58 = vld [vmem:[%s1332_s11 + $0x1e0] sm:$0xff]  ;;  %v267_v63 = vld [vmem:[%s1332_s11 + $0x148] sm:$0xff]  ;;  %v245_v4 = vld [vmem:[%s1332_s11 + $0x98] sm:$0xff] }
  0x29   : > { %v287_v0 = vld [vmem:[%s1332_s11 + $0x1e8] sm:$0xff]  ;;  %v268_v5 = vld [vmem:[%s1332_s11 + $0x150] sm:$0xff] }
  0x2a   : > { %v288_v6 = vld [vmem:[%s1332_s11 + $0x1f0] sm:$0xff] }
  0x2f   : > { %943 = vmatmul.msk.f32.gmra.mxu0 %vm295_vm1, %v229_v10  ;;  %966 = vmatmul.msk.f32.gmra.mxu2 %vm295_vm1, %v252_v11  ;;  %v246_v10 = vld [vmem:[%s1332_s11 + $0xa0] sm:$0xff]  ;;  %v289_v11 = vld [vmem:[%s1332_s11 + $0x1f8] sm:$0xff] }
  0x30   : > { %986 = vmatmul.msk.f32.gmra.mxu3 %vm295_vm1, %v272_v12  ;;  %v1479_v12 = vld [vmem:[%s1691_s2] ss:$0 sm:$0xff] }
  0x37   : > { %944 = vmatmul.msk.f32.gmra.mxu0 %vm295_vm1, %v230_v13  ;;  %967 = vmatmul.msk.f32.gmra.mxu2 %vm295_vm1, %v253_v14 }
  0x38   : > { %987 = vmatmul.msk.f32.gmra.mxu3 %vm295_vm1, %v273_v15 }
  0x3f   : > { %945 = vmatmul.msk.f32.gmra.mxu0 %vm295_vm1, %v231_v16  ;;  %968 = vmatmul.msk.f32.gmra.mxu2 %vm295_vm1, %v254_v17 }
  0x40   : > { %988 = vmatmul.msk.f32.gmra.mxu3 %vm295_vm1, %v274_v18  ;;  %v247_v18 = vld [vmem:[%s1332_s11 + $0xa8] sm:$0xff] }
  0x47   : > { %946 = vmatmul.msk.f32.gmra.mxu0 %vm295_vm1, %v232_v19  ;;  %969 = vmatmul.msk.f32.gmra.mxu2 %vm295_vm1, %v255_v20 }
  0x48   : > { %989 = vmatmul.msk.f32.gmra.mxu3 %vm295_vm1, %v275_v21 }
  0x4f   : > { %947 = vmatmul.msk.f32.gmra.mxu0 %vm295_vm1, %v233_v22  ;;  %970 = vmatmul.msk.f32.gmra.mxu2 %vm295_vm1, %v256_v23 }
  0x50   : > { %990 = vmatmul.msk.f32.gmra.mxu3 %vm295_vm1, %v276_v24  ;;  %v248_v24 = vld [vmem:[%s1332_s11 + $0xb0] sm:$0xff]  ;;  %s857_s11 = scalar_lea.sflag [#allocation3], %s216_s23 }
  0x57   : > { %948 = vmatmul.msk.f32.gmra.mxu0 %vm295_vm1, %v234_v25  ;;  %971 = vmatmul.msk.f32.gmra.mxu2 %vm295_vm1, %v257_v26 }
  0x58   : > { %991 = vmatmul.msk.f32.gmra.mxu3 %vm295_vm1, %v277_v27 }
  0x5f   : > { %949 = vmatmul.msk.f32.gmra.mxu0 %vm295_vm1, %v235_v28  ;;  %972 = vmatmul.msk.f32.gmra.mxu2 %vm295_vm1, %v258_v29 }
  0x60   : > { %992 = vmatmul.msk.f32.gmra.mxu3 %vm295_vm1, %v278_v30 }
  0x67   : > { %950 = vmatmul.msk.f32.gmra.mxu0 %vm295_vm1, %v236_v31  ;;  %973 = vmatmul.msk.f32.gmra.mxu2 %vm295_vm1, %v259_v32 }
  0x68   : > { %993 = vmatmul.msk.f32.gmra.mxu3 %vm295_vm1, %v279_v33 }
  0x6f   : > { %951 = vmatmul.msk.f32.gmra.mxu0 %vm295_vm1, %v237_v34  ;;  %974 = vmatmul.msk.f32.gmra.mxu2 %vm295_vm1, %v260_v35 }
  0x70   : > { %994 = vmatmul.msk.f32.gmra.mxu3 %vm295_vm1, %v280_v36 }
  0x77   : > { %952 = vmatmul.msk.f32.gmra.mxu0 %vm295_vm1, %v238_v37  ;;  %975 = vmatmul.msk.f32.gmra.mxu2 %vm295_vm1, %v261_v38 }
  0x78   : > { %995 = vmatmul.msk.f32.gmra.mxu3 %vm295_vm1, %v281_v39 }
  0x7f   : > { %953 = vmatmul.msk.f32.gmra.mxu0 %vm295_vm1, %v239_v40  ;;  %976 = vmatmul.msk.f32.gmra.mxu2 %vm295_vm1, %v262_v41 }
  0x80   : > { %996 = vmatmul.msk.f32.gmra.mxu3 %vm295_vm1, %v282_v42 }
  0x87   : > { %954 = vmatmul.msk.f32.gmra.mxu0 %vm295_vm1, %v240_v43  ;;  %977 = vmatmul.msk.f32.gmra.mxu2 %vm295_vm1, %v263_v44 }
  0x88   : > { %997 = vmatmul.msk.f32.gmra.mxu3 %vm295_vm1, %v283_v45 }
  0x8f   : > { %955 = vmatmul.msk.f32.gmra.mxu0 %vm295_vm1, %v241_v46  ;;  %978 = vmatmul.msk.f32.gmra.mxu2 %vm295_vm1, %v264_v47 }
  0x90   : > { %998 = vmatmul.msk.f32.gmra.mxu3 %vm295_vm1, %v284_v48 }
  0x94   : > { %v1430_v49 = vpop.f32.mrf.mxu0 }
  0x97   : > { %956 = vmatmul.msk.f32.gmra.mxu0 %vm295_vm1, %v242_v50  ;;  %979 = vmatmul.msk.f32.gmra.mxu2 %vm295_vm1, %v265_v51 }
  0x98   : > { %999 = vmatmul.msk.f32.gmra.mxu3 %vm295_vm1, %v285_v52 }
  0x9a   : > { %v1438_v53 = vpop.f32.mrf.mxu2 }
  0x9b   : > { %v638_v54 = vpop.f32.mrf.mxu3 }
  0x9c   : > { %v1440_v55 = vpop.f32.mrf.mxu0  ;;  %v639_v27 = vadd.f32 %v1479_v12, %v638_v54 }
  0x9f   : > { %957 = vmatmul.msk.f32.gmra.mxu0 %vm295_vm1, %v243_v56  ;;  %980 = vmatmul.msk.f32.gmra.mxu2 %vm295_vm1, %v266_v57 }
  0xa0   : > { %1000 = vmatmul.msk.f32.gmra.mxu3 %vm295_vm1, %v286_v58 }
  0xa2   : > { %v1448_v59 = vpop.f32.mrf.mxu2 }
  0xa3   : > { %v641_v60 = vpop.f32.mrf.mxu3 }
  0xa4   : > { %v1450_v61 = vpop.f32.mrf.mxu0  ;;  %v642_v26 = vadd.f32 %v1479_v12, %v641_v60 }
  0xa7   : > { %958 = vmatmul.msk.f32.gmra.mxu0 %vm295_vm1, %v244_v62  ;;  %981 = vmatmul.msk.f32.gmra.mxu2 %vm295_vm1, %v267_v63 }
  0xa8   : > { %1001 = vmatmul.msk.f32.gmra.mxu3 %vm295_vm1, %v287_v0 }
  0xaa   : > { %v1458_v1 = vpop.f32.mrf.mxu2 }
  0xab   : > { %v644_v2 = vpop.f32.mrf.mxu3  ;;  %v585_v60 = vadd.f32 %v1479_v12, %v1458_v1 }
  0xac   : > { %v1460_v3 = vpop.f32.mrf.mxu0  ;;  %v645_v19 = vadd.f32 %v1479_v12, %v644_v2 }
  0xaf   : > { %959 = vmatmul.msk.f32.gmra.mxu0 %vm295_vm1, %v245_v4  ;;  %982 = vmatmul.msk.f32.gmra.mxu2 %vm295_vm1, %v268_v5  ;;  %v582_v4 = vadd.f32 %v1479_v12, %v1448_v59 }
  0xb0   : > { %1002 = vmatmul.msk.f32.gmra.mxu3 %vm295_vm1, %v288_v6  ;;  %v579_v6 = vadd.f32 %v1479_v12, %v1438_v53 }
  0xb2   : > { %v1468_v7 = vpop.f32.mrf.mxu2 }
  0xb3   : > { %v647_v8 = vpop.f32.mrf.mxu3  ;;  %v588_v58 = vadd.f32 %v1479_v12, %v1468_v7 }
  0xb4   : > { %v1470_v9 = vpop.f32.mrf.mxu0  ;;  %v648_v15 = vadd.f32 %v1479_v12, %v647_v8 }
  0xb7   : > { %960 = vmatmul.msk.f32.gmra.mxu0 %vm295_vm1, %v246_v10 }
  0xb8   : > { %1003 = vmatmul.msk.f32.gmra.mxu3 %vm295_vm1, %v289_v11 }
  0xba   : > { %v590_v13 = vpop.f32.mrf.mxu2 }
  0xbb   : > { %v650_v14 = vpop.f32.mrf.mxu3  ;;  %v591_v51 = vadd.f32 %v1479_v12, %v590_v13 }
  0xbc   : > { %v1482_v16 = vpop.f32.mrf.mxu0  ;;  %v651_v17 = vadd.f32 %v1479_v12, %v650_v14 }
  0xbe   : > { %1054 = vtanh.f32 %v651_v17 }
  0xbf   : > { %961 = vmatmul.msk.f32.gmra.mxu0 %vm295_vm1, %v247_v18  ;;  %1056 = vtanh.f32 %v648_v15 }
  0xc0   : > { %1058 = vtanh.f32 %v645_v19 }
  0xc1   : > { %1060 = vtanh.f32 %v642_v26 }
  0xc2   : > { %v593_v20 = vpop.f32.mrf.mxu2  ;;  %1062 = vtanh.f32 %v639_v27 }
  0xc3   : > { %v1488_v21 = vpop.f32.mrf.mxu3  ;;  %v594_v45 = vadd.f32 %v1479_v12, %v593_v20 }
  0xc4   : > { %v1055_v22 = vpop.eup %1054  ;;  %v1490_v23 = vpop.f32.mrf.mxu0 }
  0xc5   : > { %812 = vmatpush.xpose.msrb.mxu3 %v1055_v22  ;;  %v1057_v25 = vpop.eup %1056 }
  0xc6   : > { %v1059_v30 = vpop.eup %1058 }
  0xc7   : > { %962 = vmatmul.msk.f32.gmra.mxu0 %vm295_vm1, %v248_v24  ;;  %v1061_v32 = vpop.eup %1060 }
  0xc8   : > { %v1063_v35 = vpop.eup %1062 }
  0xc9   : > { %813 = vmatpush.xpose.msrb.mxu3 %v1057_v25 }
  0xca   : > { %v596_v28 = vpop.f32.mrf.mxu2 }
  0xcb   : > { %v1496_v29 = vpop.f32.mrf.mxu3  ;;  %v597_v42 = vadd.f32 %v1479_v12, %v596_v28 }
  0xcc   : > { %v1498_v31 = vpop.f32.mrf.mxu0 }
  0xcd   : > { %814 = vmatpush.xpose.msrb.mxu3 %v1059_v30 }
  0xd1   : > { %815 = vmatpush.xpose.msrb.mxu3 %v1061_v32 }
  0xd2   : > { %v599_v33 = vpop.f32.mrf.mxu2 }
  0xd3   : > { %v1500_v34 = vpop.f32.mrf.mxu3  ;;  %v600_v38 = vadd.f32 %v1479_v12, %v599_v33 }
  0xd4   : > { %v1502_v36 = vpop.f32.mrf.mxu0 }
  0xd5   : > { %816 = vmatpush.xpose.msrb.mxu3 %v1063_v35 }
  0xda   : > { %v602_v37 = vpop.f32.mrf.mxu2 }
  0xdb   : > { %v603_v39 = vadd.f32 %v1479_v12, %v602_v37  ;;  %v1506_v40 = vpop.f32.mrf.mxu3 }
  0xdc   : > { %v1508_v41 = vpop.f32.mrf.mxu0 }
  0xdd   : > { %1064 = vtanh.f32 %v603_v39 }
  0xde   : > { %1066 = vtanh.f32 %v600_v38 }
  0xdf   : > { %1068 = vtanh.f32 %v597_v42 }
  0xe0   : > { %1070 = vtanh.f32 %v594_v45  ;;  %v537_v45 = vadd.f32 %v1479_v12, %v1508_v41 }
  0xe1   : > { %1072 = vtanh.f32 %v591_v51 }
  0xe2   : > { %v1511_v43 = vpop.f32.mrf.mxu2  ;;  %1074 = vtanh.f32 %v588_v58  ;;  %v531_v58 = vadd.f32 %v1479_v12, %v1498_v31 }
  0xe3   : > { %v1065_v44 = vpop.eup %1064  ;;  %v1514_v46 = vpop.f32.mrf.mxu3  ;;  %1076 = vtanh.f32 %v585_v60 }
  0xe4   : > { %v1516_v47 = vpop.f32.mrf.mxu0  ;;  %792 = vmatpush.xpose.msrb.mxu2 %v1065_v44  ;;  %v1067_v48 = vpop.eup %1066  ;;  %1078 = vtanh.f32 %v582_v4 }
  0xe5   : > { %v1069_v50 = vpop.eup %1068  ;;  %1080 = vtanh.f32 %v579_v6  ;;  %v540_v39 = vadd.f32 %v1479_v12, %v1516_v47 }
  0xe6   : > { %v1071_v57 = vpop.eup %1070 }
  0xe7   : > { %v1073_v63 = vpop.eup %1072 }
  0xe8   : > { %793 = vmatpush.xpose.msrb.mxu2 %v1067_v48  ;;  %v1075_v5 = vpop.eup %1074 }
  0xe9   : > { %v1077_v1 = vpop.eup %1076 }
  0xea   : > { %v1519_v52 = vpop.f32.mrf.mxu2  ;;  %v1079_v11 = vpop.eup %1078 }
  0xeb   : > { %v1521_v54 = vpop.f32.mrf.mxu3  ;;  %v1081_v59 = vpop.eup %1080 }
  0xec   : > { %v542_v56 = vpop.f32.mrf.mxu0  ;;  %794 = vmatpush.xpose.msrb.mxu2 %v1069_v50 }
  0xed   : > { %v543_v33 = vadd.f32 %v1479_v12, %v542_v56  ;;  %v534_v56 = vadd.f32 %v1479_v12, %v1502_v36  ;;  %v525_v36 = vadd.f32 %v1479_v12, %v1482_v16 }
  0xf0   : > { %795 = vmatpush.xpose.msrb.mxu2 %v1071_v57 }
  0xf2   : > { %v1527_v62 = vpop.f32.mrf.mxu2 }
  0xf3   : > { %v1529_v0 = vpop.f32.mrf.mxu3 }
  0xf4   : > { %v545_v2 = vpop.f32.mrf.mxu0  ;;  %796 = vmatpush.xpose.msrb.mxu2 %v1073_v63  ;;  %v528_v63 = vadd.f32 %v1479_v12, %v1490_v23  ;;  %v522_v23 = vadd.f32 %v1479_v12, %v1470_v9 }
  0xf5   : > { %v546_v28 = vadd.f32 %v1479_v12, %v545_v2 }
  0xf8   : > { %797 = vmatpush.xpose.msrb.mxu2 %v1075_v5 }
  0xfa   : > { %v1535_v7 = vpop.f32.mrf.mxu2 }
  0xfb   : > { %v1537_v8 = vpop.f32.mrf.mxu3 }
  0xfc   : > { %v548_v10 = vpop.f32.mrf.mxu0  ;;  %798 = vmatpush.xpose.msrb.mxu2 %v1077_v1 }
  0xfd   : > { %v549_v24 = vadd.f32 %v1479_v12, %v548_v10 }
 0x100   : > { %799 = vmatpush.xpose.msrb.mxu2 %v1079_v11 }
 0x102   : > { %v1539_v13 = vpop.f32.mrf.mxu2 }
 0x103   : > { %v1541_v14 = vpop.f32.mrf.mxu3 }
 0x104   : > { %v551_v15 = vpop.f32.mrf.mxu0  ;;  %800 = vmatpush.xpose.msrb.mxu2 %v1081_v59 }
 0x105   : > { %v552_v20 = vadd.f32 %v1479_v12, %v551_v15  ;;  %v519_v15 = vadd.f32 %v1479_v12, %v1460_v3 }
 0x10a   : > { %v1543_v17 = vpop.f32.mrf.mxu2 }
 0x10b   : > { %v1545_v53 = vpop.f32.mrf.mxu3 }
 0x10c   : > { %v554_v18 = vpop.f32.mrf.mxu0 }
 0x10d   : > { %v555_v19 = vadd.f32 %v1479_v12, %v554_v18 }
 0x10f   : > { %1082 = vtanh.f32 %v555_v19 }
 0x110   : > { %1084 = vtanh.f32 %v552_v20 }
 0x111   : > { %1086 = vtanh.f32 %v549_v24 }
 0x112   : > { %v1549_v22 = vpop.f32.mrf.mxu2  ;;  %1088 = vtanh.f32 %v546_v28 }
 0x113   : > { %v1552_v25 = vpop.f32.mrf.mxu3  ;;  %1090 = vtanh.f32 %v543_v33  ;;  %v624_v3 = vadd.f32 %v1479_v12, %v1549_v22 }
 0x114   : > { %v1554_v26 = vpop.f32.mrf.mxu0  ;;  %1092 = vtanh.f32 %v540_v39  ;;  %v621_v39 = vadd.f32 %v1479_v12, %v1543_v17 }
 0x115   : > { %v1083_v27 = vpop.eup %1082  ;;  %1094 = vtanh.f32 %v537_v45 }
 0x116   : > { %772 = vmatpush.xpose.msra.mxu1 %v1083_v27  ;;  %v1085_v30 = vpop.eup %1084  ;;  %1096 = vtanh.f32 %v534_v56  ;;  %v516_v27 = vadd.f32 %v1479_v12, %v1450_v61 }
 0x117   : > { %v1087_v38 = vpop.eup %1086  ;;  %1098 = vtanh.f32 %v531_v58 }
 0x118   : > { %v1089_v42 = vpop.eup %1088  ;;  %1100 = vtanh.f32 %v528_v63 }
 0x119   : > { %v1091_v50 = vpop.eup %1090 }
 0x11a   : > { %v626_v32 = vpop.f32.mrf.mxu2  ;;  %773 = vmatpush.xpose.msra.mxu1 %v1085_v30  ;;  %v1093_v57 = vpop.eup %1092 }
 0x11b   : > { %v1558_v35 = vpop.f32.mrf.mxu3  ;;  %v1095_v41 = vpop.eup %1094  ;;  %v627_v19 = vadd.f32 %v1479_v12, %v626_v32  ;;  %v513_v32 = vadd.f32 %v1479_v12, %v1440_v55  ;;  %v510_v55 = vadd.f32 %v1479_v12, %v1430_v49 }
 0x11c   : > { %v1560_v37 = vpop.f32.mrf.mxu0  ;;  %v1097_v4 = vpop.eup %1096 }
 0x11d   : > { %v1099_v10 = vpop.eup %1098 }
 0x11e   : > { %774 = vmatpush.xpose.msra.mxu1 %v1087_v38  ;;  %v1101_v59 = vpop.eup %1100 }
 0x122   : > { %v629_v44 = vpop.f32.mrf.mxu2  ;;  %775 = vmatpush.xpose.msra.mxu1 %v1089_v42 }
 0x123   : > { %v1568_v51 = vpop.f32.mrf.mxu3  ;;  %v630_v11 = vadd.f32 %v1479_v12, %v629_v44 }
 0x124   : > { %v1566_v48 = vpop.f32.mrf.mxu0 }
 0x126   : > { %776 = vmatpush.xpose.msra.mxu1 %v1091_v50  ;;  %v618_v50 = vadd.f32 %v1479_v12, %v1539_v13 }
 0x12a   : > { %v632_v47 = vpop.f32.mrf.mxu2  ;;  %777 = vmatpush.xpose.msra.mxu1 %v1093_v57 }
 0x12b   : > { %v1578_v2 = vpop.f32.mrf.mxu3  ;;  %v633_v31 = vadd.f32 %v1479_v12, %v632_v47  ;;  %v615_v47 = vadd.f32 %v1479_v12, %v1535_v7 }
 0x12c   : > { %v1574_v60 = vpop.f32.mrf.mxu0 }
 0x12d   : > { %v567_v13 = vadd.f32 %v1479_v12, %v1574_v60 }
 0x12e   : > { %778 = vmatpush.xpose.msra.mxu1 %v1095_v41 }
 0x132   : > { %v635_v5 = vpop.f32.mrf.mxu2  ;;  %779 = vmatpush.xpose.msra.mxu1 %v1097_v4 }
 0x133   : > { %v636_v6 = vadd.f32 %v1479_v12, %v635_v5  ;;  %v695_v16 = vpop.f32.mrf.mxu3  ;;  %v693_v5 = vadd.f32 %v1479_v12, %v1578_v2 }
 0x134   : > { %v569_v1 = vpop.f32.mrf.mxu0  ;;  %v696_v49 = vadd.f32 %v1479_v12, %v695_v16 }
 0x135   : > { %1102 = vtanh.f32 %v636_v6  ;;  %v570_v56 = vadd.f32 %v1479_v12, %v569_v1  ;;  %v564_v1 = vadd.f32 %v1479_v12, %v1566_v48  ;;  %v687_v48 = vadd.f32 %v1479_v12, %v1558_v35 }
 0x136   : > { %1104 = vtanh.f32 %v525_v36  ;;  %780 = vmatpush.xpose.msra.mxu1 %v1099_v10  ;;  %v690_v10 = vadd.f32 %v1479_v12, %v1568_v51  ;;  %v606_v51 = vadd.f32 %v1479_v12, %v1511_v43  ;;  %v681_v43 = vadd.f32 %v1479_v12, %v1545_v53 }
 0x137   : > { %1106 = vtanh.f32 %v633_v31  ;;  %v612_v31 = vadd.f32 %v1479_v12, %v1527_v62 }
 0x138   : > { %1108 = vtanh.f32 %v522_v23  ;;  %v609_v23 = vadd.f32 %v1479_v12, %v1519_v52 }
 0x139   : > { %1110 = vtanh.f32 %v630_v11 }
 0x13a   : > { %781 = vmatpush.xpose.msra.mxu1 %v1101_v59  ;;  %1112 = vtanh.f32 %v519_v15  ;;  %v561_v59 = vadd.f32 %v1479_v12, %v1560_v37  ;;  %v558_v15 = vadd.f32 %v1479_v12, %v1554_v26  ;;  %v684_v37 = vadd.f32 %v1479_v12, %v1552_v25 }
 0x13b   : > { %v1103_v18 = vpop.eup %1102  ;;  %1114 = vtanh.f32 %v627_v19  ;;  %v698_v33 = vpop.f32.mrf.mxu3  ;;  %v678_v25 = vadd.f32 %v1479_v12, %v1541_v14  ;;  %v672_v14 = vadd.f32 %v1479_v12, %v1529_v0  ;;  %v666_v0 = vadd.f32 %v1479_v12, %v1514_v46 }
 0x13c   : > { %v1105_v20 = vpop.eup %1104  ;;  %v572_v24 = vpop.f32.mrf.mxu0  ;;  %817 = vmatpush.xpose.msrb.mxu3 %v1103_v18  ;;  %1116 = vtanh.f32 %v516_v27  ;;  %v699_v22 = vadd.f32 %v1479_v12, %v698_v33  ;;  %v766_v33 = vld [vmem:[%s1693_s4] sm:$0xff]  ;;  %v657_v46 = vadd.f32 %v1479_v12, %v1496_v29 }
 0x13d   : > { %v1107_v9 = vpop.eup %1106  ;;  %1118 = vtanh.f32 %v624_v3  ;;  %v573_v44 = vadd.f32 %v1479_v12, %v572_v24 }
 0x13e   : > { %782 = vmatpush.xpose.msra.mxu1 %v1105_v20  ;;  %v1109_v28 = vpop.eup %1108  ;;  %1120 = vtanh.f32 %v513_v32  ;;  %v669_v32 = vadd.f32 %v1479_v12, %v1521_v54 }
 0x13f   : > { %v1111_v30 = vpop.eup %1110 }
 0x140   : > { %818 = vmatpush.xpose.msrb.mxu3 %v1107_v9  ;;  %v1113_v38 = vpop.eup %1112 }
 0x141   : > { %v1115_v61 = vpop.eup %1114 }
 0x142   : > { %783 = vmatpush.xpose.msra.mxu1 %v1109_v28  ;;  %v1117_v17 = vpop.eup %1116  ;;  %v675_v28 = vadd.f32 %v1479_v12, %v1537_v8 }
 0x143   : > { %v1119_v57 = vpop.eup %1118 }
 0x144   : > { %v575_v42 = vpop.f32.mrf.mxu0  ;;  %819 = vmatpush.xpose.msrb.mxu3 %v1111_v30  ;;  %v1121_v58 = vpop.eup %1120  ;;  %v765_v30 = vld [vmem:[%s1692_s3] sm:$0xff] }
 0x145   : > { %v576_v45 = vadd.f32 %v1479_v12, %v575_v42  ;;  %v663_v42 = vadd.f32 %v1479_v12, %v1506_v40 }
 0x146   : > { %784 = vmatpush.xpose.msra.mxu1 %v1113_v38  ;;  %v1246_v38 = vmov 0  }
 0x147   : > { %1122 = vtanh.f32 %v576_v45  ;;  %1052 = vset.pattern.permute.xlu0 %v1246_v38 }
 0x148   : > { %1124 = vtanh.f32 %v621_v39  ;;  %820 = vmatpush.xpose.msrb.mxu3 %v1115_v61  ;;  %769 = vperm.xlu0 %1052, %v766_v33   ;;  %v660_v61 = vadd.f32 %v1479_v12, %v1500_v34 }
 0x149   : > { %1126 = vtanh.f32 %v573_v44 }
 0x14a   : > { %1128 = vtanh.f32 %v699_v22  ;;  %785 = vmatpush.xpose.msra.mxu1 %v1117_v17  ;;  %v654_v22 = vadd.f32 %v1479_v12, %v1488_v21 }
 0x14b   : > { %1130 = vtanh.f32 %v510_v55 }
 0x14c   : > { %1132 = vtanh.f32 %v618_v50  ;;  %821 = vmatpush.xpose.msrb.mxu3 %v1119_v57 }
 0x14d   : > { %v1123_v41 = vpop.eup %1122  ;;  %1134 = vtanh.f32 %v570_v56 }
 0x14e   : > { %v1125_v63 = vpop.eup %1124  ;;  %786 = vmatpush.xpose.msra.mxu1 %v1121_v58  ;;  %801 = vmatpush.xpose.msrb.mxu2 %v1123_v41  ;;  %1136 = vtanh.f32 %v615_v47 }
 0x14f   : > { %v1127_v4 = vpop.eup %1126  ;;  %1138 = vtanh.f32 %v696_v49 }
 0x150   : > { %v1129_v36 = vpop.eup %1128  ;;  %822 = vmatpush.xpose.msrb.mxu3 %v1125_v63  ;;  %1140 = vtanh.f32 %v567_v13 }
 0x151   : > { %v1131_v7 = vpop.eup %1130  ;;  %1142 = vtanh.f32 %v693_v5 }
 0x152   : > { %v1133_v6 = vpop.eup %1132  ;;  %787 = vmatpush.xpose.msra.mxu1 %v1131_v7  ;;  %802 = vmatpush.xpose.msrb.mxu2 %v1127_v4  ;;  %1144 = vtanh.f32 %v612_v31 }
 0x153   : > { %v1135_v60 = vpop.eup %1134  ;;  %1146 = vtanh.f32 %v564_v1 }
 0x154   : > { %823 = vmatpush.xpose.msrb.mxu3 %v1133_v6  ;;  %v1137_v2 = vpop.eup %1136  ;;  %1148 = vtanh.f32 %v690_v10 }
 0x155   : > { %v1139_v62 = vpop.eup %1138  ;;  %1150 = vtanh.f32 %v609_v23  ;;  %788 = vmatmul.f32.vlgmr.msra.gmra.mxu1 %v765_v30 }
 0x156   : > { %832 = vmatpush.xpose.msrb.mxu1 %v1129_v36  ;;  %803 = vmatpush.xpose.msrb.mxu2 %v1135_v60  ;;  %v1141_v11 = vpop.eup %1140  ;;  %1152 = vtanh.f32 %v561_v59 }
 0x157   : > { %v1143_v16 = vpop.eup %1142  ;;  %1154 = vtanh.f32 %v687_v48 }
 0x158   : > { %824 = vmatpush.xpose.msrb.mxu3 %v1137_v2  ;;  %v1145_v52 = vpop.eup %1144  ;;  %1156 = vtanh.f32 %v606_v51 }
 0x159   : > { %v1147_v35 = vpop.eup %1146  ;;  %1158 = vtanh.f32 %v558_v15 }
 0x15a   : > { %833 = vmatpush.xpose.msrb.mxu1 %v1139_v62  ;;  %804 = vmatpush.xpose.msrb.mxu2 %v1141_v11  ;;  %v1149_v18 = vpop.eup %1148  ;;  %1160 = vtanh.f32 %v684_v37 }
 0x15b   : > { %v1151_v19 = vpop.eup %1150  ;;  %1162 = vtanh.f32 %v681_v43 }
 0x15c   : > { %825 = vmatpush.xpose.msrb.mxu3 %v1145_v52  ;;  %v1153_v26 = vpop.eup %1152  ;;  %1164 = vtanh.f32 %v678_v25 }
 0x15d   : > { %v1155_v20 = vpop.eup %1154  ;;  %1166 = vtanh.f32 %v675_v28 }
 0x15e   : > { %834 = vmatpush.xpose.msrb.mxu1 %v1143_v16  ;;  %805 = vmatpush.xpose.msrb.mxu2 %v1147_v35  ;;  %v1157_v24 = vpop.eup %1156  ;;  %1168 = vtanh.f32 %v672_v14 }
 0x15f   : > { %v1159_v9 = vpop.eup %1158  ;;  %1170 = vtanh.f32 %v669_v32 }
 0x160   : > { %826 = vmatpush.xpose.msrb.mxu3 %v1151_v19  ;;  %v1161_v27 = vpop.eup %1160  ;;  %1172 = vtanh.f32 %v666_v0 }
 0x161   : > { %v1163_v53 = vpop.eup %1162  ;;  %1174 = vtanh.f32 %v663_v42 }
 0x162   : > { %835 = vmatpush.xpose.msrb.mxu1 %v1149_v18  ;;  %806 = vmatpush.xpose.msrb.mxu2 %v1153_v26  ;;  %v1165_v3 = vpop.eup %1164  ;;  %1176 = vtanh.f32 %v660_v61 }
 0x163   : > { %v1167_v8 = vpop.eup %1166  ;;  %1178 = vtanh.f32 %v657_v46 }
 0x164   : > { %827 = vmatpush.xpose.msrb.mxu3 %v1157_v24  ;;  %v1169_v39 = vpop.eup %1168  ;;  %1180 = vtanh.f32 %v654_v22 }
 0x165   : > { %v1171_v54 = vpop.eup %1170 }
 0x166   : > { %836 = vmatpush.xpose.msrb.mxu1 %v1155_v20  ;;  %807 = vmatpush.xpose.msrb.mxu2 %v1159_v9  ;;  %v1173_v44 = vpop.eup %1172 }
 0x167   : > { %828 = vmatmul.f32.vlgmr.msrb.gmra.mxu3 %v765_v30  ;;  %v1175_v45 = vpop.eup %1174 }
 0x168   : > { %v1177_v40 = vpop.eup %1176 }
 0x169   : > { %808 = vmatmul.f32.vlgmr.msrb.gmra.mxu2 %v765_v30  ;;  %v1179_v55 = vpop.eup %1178 }
 0x16a   : > { %837 = vmatpush.xpose.msrb.mxu1 %v1161_v27  ;;  %v1181_v34 = vpop.eup %1180 }
 0x16e   : > { %838 = vmatpush.xpose.msrb.mxu1 %v1163_v53 }
 0x172   : > { %839 = vmatpush.xpose.msrb.mxu1 %v1165_v3 }
 0x176   : > { %840 = vmatpush.xpose.msrb.mxu1 %v1167_v8 }
 0x17a   : > { %841 = vmatpush.xpose.msrb.mxu1 %v1169_v39 }
 0x17e   : > { %842 = vmatpush.xpose.msrb.mxu1 %v1171_v54 }
 0x182   : > { %843 = vmatpush.xpose.msrb.mxu1 %v1173_v44 }
 0x186   : > { %844 = vmatpush.xpose.msrb.mxu1 %v1175_v45 }
 0x18a   : > { %845 = vmatpush.xpose.msrb.mxu1 %v1177_v40 }
 0x18e   : > { %846 = vmatpush.xpose.msrb.mxu1 %v1179_v55 }
 0x192   : > { %847 = vmatpush.xpose.msrb.mxu1 %v1181_v34 }
 0x195   : > { %848 = vmatmul.f32.vlgmr.msrb.gmra.mxu1 %v765_v30 }
 0x1ba   : > { %v770_v50 = vpop.permute.xlu0 %769 }
 0x1d2   : > { %v789_v29 = vpop.f32.mrf.mxu1 }
 0x1d3   : > { %v790_v17 = vadd.f32 %v789_v29, %v770_v50 }
 0x1d5   : > { %852 = vst [vmem:[%s218_s26] sm:$0xff] %v790_v17 }
 0x1ea   : > { %v829_v12 = vpop.f32.mrf.mxu3 }
 0x1eb   : > { %v830_v21 = vadd.f32 %v829_v12, %v770_v50 }
 0x1ec   : > { %v809_v56 = vpop.f32.mrf.mxu2 }
 0x1ed   : > { %v810_v57 = vadd.f32 %v809_v56, %v770_v50  ;;  %854 = vst [vmem:[%s218_s26 + $0x10] sm:$0xff] %v830_v21 }
 0x1ef   : > { %853 = vst [vmem:[%s218_s26 + $0x8] sm:$0xff] %v810_v57 }
 0x212   : > { %v849_v47 = vpop.f32.mrf.mxu1 }
 0x213   : > { %v850_v58 = vadd.f32 %v849_v47, %v770_v50 }
 0x215   : > { %855 = vst [vmem:[%s218_s26 + $0x18] sm:$0xff] %v850_v58 }
 0x216   : > { %1209 = shalt.err (!%p1206_p3)
}
 0x217   : > { %1012 = dma.vmem_to_hbm [thread:$0]  (%p1315_p5), %s871_s9, 512, %s873_s10, %s857_s11  }
 0x218 PF: > { %p1018_p4 = scmp.ge.s32.totalorder %s1244_s21, 2  ;;  %s884_s23 = sand.u32 1, %s1232_s18  }
 0x219   : > { %s885_s25 = scalar_lea.sflag [#allocation3], %s884_s23 }
 0x21a   : > { %p1015_p7 = pnand %p1018_p4, %p1319_p6 }
 0x21c   : > { %p1016_p8 = pneg %p1015_p7 }
 0x21e   : > { %1227 = dma.done.wait (%p1016_p8), %s885_s25, 512  }
 0x21f   : > { %1229 = vsyncadd (%p1016_p8), %s885_s25, 4294966784  ;;  %p15_p9 = scmp.ge.s32.totalorder %s1302_s24, 4   ;;  %s1697_s18 = smov %s1236_s19 }
 0x220   : > { %s1698_s19 = smov %s1240_s20  ;;  %s1699_s20 = smov %s1313_s27 }
 0x221   : > { %s1700_s21 = smov %s1302_s24  ;;  %17 = sbr.rel (!%p15_p9) target bundleno = 3 (0x3), region = 75 }
 0x226   :  { %891 = vsyncpa [#allocation3], 1 }
 0x227   :  { %893 = vsyncpa [#allocation3 + $0x1], 1 }

</bundles_post_ra>
